<compile_context>
chip_gen: v6e
topology: v6e:2x2x1
jax: 0.10.0
libtpu: 0.0.40
codegen_flags: <defaults>
</compile_context>

<pallas_src>
import functools

import jax
import jax.numpy as jnp
from jax.experimental import pallas as pl
from jax.experimental.pallas import tpu as pltpu


OUT_W = 8  # narrow output slab: col 0 = rank, col 1 = aux/cls, cols 2.. = 0


def _round_up(x, m):
    return (x + m - 1) // m * m


def slab_layout(num_features, hidden_layers):
    """Row offsets of each parameter section inside the packed [rows, width] slab."""
    F = num_features
    H0, H1 = hidden_layers
    noise = 0                              # 2 rows: [alpha|alpha], [beta|beta]
    w0 = _round_up(noise + 2, 8)           # 2F rows: block-diag [w0a 0; 0 w0b]
    b0 = _round_up(w0 + 2 * F, 8)          # 1 row:  [b0a | b0b]
    w1 = _round_up(b0 + 1, 8)              # 2H0 rows: block-diag [w1a 0; 0 w1b]
    b1 = _round_up(w1 + 2 * H0, 8)         # 1 row:  [b1a | b1b]
    wr = _round_up(b1 + 1, 8)              # 2H1 rows: fused rank/cls weights
    rows = _round_up(wr + 2 * H1, 8)
    width = _round_up(max(2 * F, 2 * H0, 2 * H1, OUT_W), 128)
    return dict(noise=noise, w0=w0, b0=b0, w1=w1, b1=b1, wr=wr, rows=rows, width=width)


def pack_params(params, num_features, hidden_layers):
    """One-time host-side packing of all parameters into a single f32 slab."""
    F = num_features
    H0, H1 = hidden_layers
    off = slab_layout(F, hidden_layers)
    slab = jnp.zeros((off["rows"], off["width"]), jnp.float32)

    alpha = params["alpha"].reshape(-1)
    beta = params["beta"].reshape(-1)
    slab = slab.at[off["noise"] + 0, 0:F].set(alpha)
    slab = slab.at[off["noise"] + 0, F:2 * F].set(alpha)
    slab = slab.at[off["noise"] + 1, 0:F].set(beta)
    slab = slab.at[off["noise"] + 1, F:2 * F].set(beta)

    # Block-diagonal feature weights -> one fused MXU pass per layer.
    slab = slab.at[off["w0"]:off["w0"] + F, 0:H0].set(params["w0a"])
    slab = slab.at[off["w0"] + F:off["w0"] + 2 * F, H0:2 * H0].set(params["w0b"])
    slab = slab.at[off["b0"], 0:H0].set(params["b0a"].reshape(-1))
    slab = slab.at[off["b0"], H0:2 * H0].set(params["b0b"].reshape(-1))

    slab = slab.at[off["w1"]:off["w1"] + H0, 0:H1].set(params["w1a"])
    slab = slab.at[off["w1"] + H0:off["w1"] + 2 * H0, H1:2 * H1].set(params["w1b"])
    slab = slab.at[off["b1"], 0:H1].set(params["b1a"].reshape(-1))
    slab = slab.at[off["b1"], H1:2 * H1].set(params["b1b"].reshape(-1))

    wr = params["wr"][:, 0]
    # Column 0: pairwise ranker ((h0 - h1)/2) @ wr  ->  [wr/2; -wr/2]
    slab = slab.at[off["wr"]:off["wr"] + H1, 0].set(0.5 * wr)
    slab = slab.at[off["wr"] + H1:off["wr"] + 2 * H1, 0].set(-0.5 * wr)
    # Column 1: aux/cls ranker (h0/2) @ wr          ->  [wr/2; 0]
    slab = slab.at[off["wr"]:off["wr"] + H1, 1].set(0.5 * wr)
    return slab


def _direct_ranker_kernel(x0_ref, x1_ref, w_ref, out_ref, *, F, H0, H1, off, cdt):
    f32 = jnp.float32
    no = off["noise"]

    # Lane-pack the pair: doc0 -> lanes [0, F), doc1 -> lanes [F, 2F).
    X = jnp.concatenate([x0_ref[...], x1_ref[...]], axis=1).astype(cdt)   # [TB, 2F]

    # Noise module ('sigmoid_full'): one EUP pass over both documents.
    alpha = w_ref[no + 0:no + 1, 0:2 * F].astype(cdt)                     # [1, 2F]
    beta = w_ref[no + 1:no + 2, 0:2 * F].astype(cdt)                      # [1, 2F]
    H = jax.nn.sigmoid(X * alpha + beta)                                  # [TB, 2F]

    # Feature layer 0: single block-diagonal matmul for both branches.
    W0 = w_ref[off["w0"]:off["w0"] + 2 * F, 0:2 * H0].astype(cdt)         # [2F, 2H0]
    b0 = w_ref[off["b0"]:off["b0"] + 1, 0:2 * H0]                         # [1, 2H0]
    A0 = jnp.tanh((jnp.dot(H, W0, preferred_element_type=f32) + b0).astype(cdt))

    # Feature layer 1.
    W1 = w_ref[off["w1"]:off["w1"] + 2 * H0, 0:2 * H1].astype(cdt)        # [2H0, 2H1]
    b1 = w_ref[off["b1"]:off["b1"] + 1, 0:2 * H1]                         # [1, 2H1]
    A1 = jnp.tanh((jnp.dot(A0, W1, preferred_element_type=f32) + b1).astype(cdt))

    # Ranking + aux ranker fused into one narrow matmul (0.5 scaling and the
    # h0-h1 difference are folded into the packed weights).
    Wr = w_ref[off["wr"]:off["wr"] + 2 * H1, 0:OUT_W].astype(cdt)         # [2H1, 8]
    out_ref[...] = jnp.tanh(
        jnp.dot(A1, Wr, preferred_element_type=f32)).astype(out_ref.dtype)


def _select_tile(B, block_b):
    block_b = _round_up(block_b, 8)
    TB = min(block_b, _round_up(B, 8))
    # v7x megacore: large batches should give >= 2 grid steps so the "parallel"
    # batch axis can shard across both TensorCores (v5e/v6e have 1 TC).
    if B >= 512 and pl.cdiv(B, TB) < 2:
        TB = max(128, _round_up(pl.cdiv(B, 2), 128))
    return TB


def direct_ranker_forward(w_slab, x0, x1, *, hidden_layers, block_b=2048, use_bf16=False):
    B, F = x0.shape
    H0, H1 = hidden_layers
    off = slab_layout(F, hidden_layers)
    assert w_slab.shape == (off["rows"], off["width"])
    # use_bf16: worthwhile on v6e/v7x (bf16-native VPU/EUP); keep f32 on v5e.
    cdt = jnp.bfloat16 if use_bf16 else jnp.float32

    TB = _select_tile(B, block_b)
    grid_n = pl.cdiv(B, TB)
    Bp = grid_n * TB
    if Bp != B:
        pad = ((0, Bp - B), (0, 0))
        x0 = jnp.pad(x0, pad)
        x1 = jnp.pad(x1, pad)

    kernel = functools.partial(_direct_ranker_kernel, F=F, H0=H0, H1=H1, off=off, cdt=cdt)

    out = pl.pallas_call(
        kernel,
        out_shape=jax.ShapeDtypeStruct((Bp, OUT_W), jnp.float32),
        grid_spec=pltpu.PrefetchScalarGridSpec(
            num_scalar_prefetch=0,
            grid=(grid_n,),
            in_specs=[
                pl.BlockSpec((TB, F), lambda i: (i, 0)),                       # x0 tile
                pl.BlockSpec((TB, F), lambda i: (i, 0)),                       # x1 tile
                pl.BlockSpec((off["rows"], off["width"]), lambda i: (0, 0)),   # params (resident)
            ],
            out_specs=pl.BlockSpec((TB, OUT_W), lambda i: (i, 0)),
        ),
        compiler_params=pltpu.CompilerParams(
            dimension_semantics=("parallel",),     # batch tiles shard across TCs (v7x)
            vmem_limit_bytes=32 * 1024 * 1024,     # safe on v5e/v6e/v7x at TB<=4096
        ),
    )(x0, x1, w_slab)

    # col 0 = pairwise rank, col 1 = aux/cls ranker.
    return out[:B, 0:1], out[:B, 1:2]


def init_params(key, num_features, hidden_layers):
    """Deterministic init mirroring nn.init.normal_ (mean=0, std=1)."""
    ks = jax.random.split(key, 12)
    h0, h1 = hidden_layers
    alpha = jax.random.normal(ks[0], (1, num_features), jnp.float32)
    w_beta = jax.random.normal(ks[1], (1, num_features), jnp.float32)
    noise = jax.random.normal(ks[2], (1, num_features), jnp.float32)
    beta = noise * w_beta
    return {
        "alpha": alpha,
        "beta": beta,
        "w0a": jax.random.normal(ks[3], (num_features, h0), jnp.float32),
        "b0a": jax.random.normal(ks[4], (1, h0), jnp.float32),
        "w0b": jax.random.normal(ks[5], (num_features, h0), jnp.float32),
        "b0b": jax.random.normal(ks[6], (1, h0), jnp.float32),
        "w1a": jax.random.normal(ks[7], (h0, h1), jnp.float32),
        "b1a": jax.random.normal(ks[8], (1, h1), jnp.float32),
        "w1b": jax.random.normal(ks[9], (h0, h1), jnp.float32),
        "b1b": jax.random.normal(ks[10], (1, h1), jnp.float32),
        "wr": jax.random.normal(ks[11], (h1, 1), jnp.float32),
    }


def reference_forward(params, x0, x1):
    """Pure-JAX reference with identical semantics (sanity check)."""
    h0 = jax.nn.sigmoid(x0 * params["alpha"] + params["beta"])
    h1 = jax.nn.sigmoid(x1 * params["alpha"] + params["beta"])
    h0 = jnp.tanh(h0 @ params["w0a"] + params["b0a"])
    h1 = jnp.tanh(h1 @ params["w0b"] + params["b0b"])
    h0 = jnp.tanh(h0 @ params["w1a"] + params["b1a"])
    h1 = jnp.tanh(h1 @ params["w1b"] + params["b1b"])
    rank = jnp.tanh(((h0 - h1) * 0.5) @ params["wr"])
    cls = jnp.tanh((h0 * 0.5) @ params["wr"])
    return rank, cls


if __name__ == "__main__":
    # Module-consistent shapes: num_features=32, hidden_layers=[10, 5] (default).
    F = 32
    hidden_layers = [10, 5]

    key = jax.random.PRNGKey(0)
    k_params, k_x0, k_x1 = jax.random.split(key, 3)
    params = init_params(k_params, F, hidden_layers)
    w_slab = pack_params(params, F, hidden_layers)   # one-time packing -> single weight DMA

    # --- small batch (single grid step) ---
    B = 8
    x0 = jax.random.normal(k_x0, (B, F), jnp.float32)
    x1 = jax.random.normal(k_x1, (B, F), jnp.float32)
    rank_out, cls_out = direct_ranker_forward(w_slab, x0, x1, hidden_layers=hidden_layers)
    jax.block_until_ready((rank_out, cls_out))
    ref_rank, ref_cls = reference_forward(params, x0, x1)
    assert rank_out.shape == (B, 1) and cls_out.shape == (B, 1)
    assert jnp.allclose(rank_out, ref_rank, atol=1e-5, rtol=1e-5)
    assert jnp.allclose(cls_out, ref_cls, atol=1e-5, rtol=1e-5)

    # --- multi-tile grid + non-divisible batch (exercises padded tail tile) ---
    Bg = 300
    x0g = jax.random.normal(jax.random.PRNGKey(1), (Bg, F), jnp.float32)
    x1g = jax.random.normal(jax.random.PRNGKey(2), (Bg, F), jnp.float32)
    rank_g, cls_g = direct_ranker_forward(w_slab, x0g, x1g,
                                          hidden_layers=hidden_layers, block_b=128)
    jax.block_until_ready((rank_g, cls_g))
    ref_rank_g, ref_cls_g = reference_forward(params, x0g, x1g)
    assert rank_g.shape == (Bg, 1) and cls_g.shape == (Bg, 1)
    assert jnp.allclose(rank_g, ref_rank_g, atol=1e-5, rtol=1e-5)
    assert jnp.allclose(cls_g, ref_cls_g, atol=1e-5, rtol=1e-5)

    # --- bf16 intermediates (v6e/v7x optimization; keep f32 on v5e) ---
    rank_b, cls_b = direct_ranker_forward(w_slab, x0g, x1g, hidden_layers=hidden_layers,
                                          block_b=128, use_bf16=True)
    jax.block_until_ready((rank_b, cls_b))
    assert jnp.allclose(rank_b, ref_rank_g, atol=1e-1)
    assert jnp.allclose(cls_b, ref_cls_g, atol=1e-1)

    # TODO(synk): get_feed_dict / get_feed_dict_queries are host-side data sampling
    # utilities (torch.unique / randint) with no kernel equivalent.
    print("KERNEL_OK")
</pallas_src>

<mosaic_0001>
module attributes {stable_mosaic.version = 11 : i64} {
  func.func @_direct_ranker_kernel(%arg0: i32, %arg1: memref<8x32xf32, #tpu.memory_space<vmem>>, %arg2: memref<8x32xf32, #tpu.memory_space<vmem>>, %arg3: memref<128x128xf32, #tpu.memory_space<vmem>>, %arg4: memref<8x8xf32, #tpu.memory_space<vmem>>) attributes {dimension_semantics = [#tpu.dimension_semantics<parallel>], iteration_bounds = array<i64: 1>, scalar_prefetch = 0 : i64, scratch_operands = 0 : i64, tpu.core_type = #tpu.core_type<tc>, window_params = [{transform_indices = @transform_0, window_bounds = array<i64: 8, 32>}, {transform_indices = @transform_1, window_bounds = array<i64: 8, 32>}, {pipeline_mode = #tpu.pipeline_mode<synchronous>, transform_indices = @transform_2, window_bounds = array<i64: 128, 128>}, {transform_indices = @transform_3, window_bounds = array<i64: 8, 8>}]} {
    %c0 = arith.constant 0 : index
    %c0_0 = arith.constant 0 : index
    %0 = vector.load %arg1[%c0, %c0_0] : memref<8x32xf32, #tpu.memory_space<vmem>>, vector<8x32xf32>
    %c0_1 = arith.constant 0 : index
    %c0_2 = arith.constant 0 : index
    %1 = vector.load %arg2[%c0_1, %c0_2] : memref<8x32xf32, #tpu.memory_space<vmem>>, vector<8x32xf32>
    %2 = tpu.concatenate %0, %1 in 1 : vector<8x32xf32>, vector<8x32xf32> -> vector<8x64xf32>
    %c0_3 = arith.constant 0 : index
    %c0_4 = arith.constant 0 : index
    %3 = vector.load %arg3[%c0_3, %c0_4] : memref<128x128xf32, #tpu.memory_space<vmem>>, vector<1x64xf32>
    %c1 = arith.constant 1 : index
    %c0_5 = arith.constant 0 : index
    %4 = vector.load %arg3[%c1, %c0_5] : memref<128x128xf32, #tpu.memory_space<vmem>>, vector<1x64xf32>
    %5 = vector.broadcast %3 : vector<1x64xf32> to vector<8x64xf32>
    %6 = arith.mulf %2, %5 : vector<8x64xf32>
    %7 = vector.broadcast %4 : vector<1x64xf32> to vector<8x64xf32>
    %8 = arith.addf %6, %7 : vector<8x64xf32>
    %9 = arith.negf %8 : vector<8x64xf32>
    %10 = math.exp %9 : vector<8x64xf32>
    %cst = arith.constant 1.000000e+00 : f32
    %11 = vector.broadcast %cst : f32 to vector<8x64xf32>
    %12 = arith.addf %11, %10 : vector<8x64xf32>
    %13 = arith.divf %11, %12 : vector<8x64xf32>
    %c8 = arith.constant 8 : index
    %c0_6 = arith.constant 0 : index
    %14 = vector.load %arg3[%c8, %c0_6] : memref<128x128xf32, #tpu.memory_space<vmem>>, vector<64x20xf32>
    %c72 = arith.constant 72 : index
    %c0_7 = arith.constant 0 : index
    %15 = vector.load %arg3[%c72, %c0_7] : memref<128x128xf32, #tpu.memory_space<vmem>>, vector<1x20xf32>
    %cst_8 = arith.constant dense<0.000000e+00> : vector<8x20xf32>
    %16 = tpu.matmul %13, %14, %cst_8 {dimension_numbers = #tpu.dot_dimension_numbers<[1], [0], [0], [1], [0, 0, 1, 1], [], []>} : vector<8x64xf32>, vector<64x20xf32>, vector<8x20xf32> -> vector<8x20xf32>
    %17 = vector.broadcast %15 : vector<1x20xf32> to vector<8x20xf32>
    %18 = arith.addf %16, %17 : vector<8x20xf32>
    %19 = math.tanh %18 : vector<8x20xf32>
    %c80 = arith.constant 80 : index
    %c0_9 = arith.constant 0 : index
    %20 = vector.load %arg3[%c80, %c0_9] : memref<128x128xf32, #tpu.memory_space<vmem>>, vector<20x10xf32>
    %c104 = arith.constant 104 : index
    %c0_10 = arith.constant 0 : index
    %21 = vector.load %arg3[%c104, %c0_10] : memref<128x128xf32, #tpu.memory_space<vmem>>, vector<1x10xf32>
    %cst_11 = arith.constant dense<0.000000e+00> : vector<8x10xf32>
    %22 = tpu.matmul %19, %20, %cst_11 {dimension_numbers = #tpu.dot_dimension_numbers<[1], [0], [0], [1], [0, 0, 1, 1], [], []>} : vector<8x20xf32>, vector<20x10xf32>, vector<8x10xf32> -> vector<8x10xf32>
    %23 = vector.broadcast %21 : vector<1x10xf32> to vector<8x10xf32>
    %24 = arith.addf %22, %23 : vector<8x10xf32>
    %25 = math.tanh %24 : vector<8x10xf32>
    %c112 = arith.constant 112 : index
    %c0_12 = arith.constant 0 : index
    %26 = vector.load %arg3[%c112, %c0_12] : memref<128x128xf32, #tpu.memory_space<vmem>>, vector<10x8xf32>
    %cst_13 = arith.constant dense<0.000000e+00> : vector<8x8xf32>
    %27 = tpu.matmul %25, %26, %cst_13 {dimension_numbers = #tpu.dot_dimension_numbers<[1], [0], [0], [1], [0, 0, 1, 1], [], []>} : vector<8x10xf32>, vector<10x8xf32>, vector<8x8xf32> -> vector<8x8xf32>
    %28 = math.tanh %27 : vector<8x8xf32>
    %c0_14 = arith.constant 0 : index
    %c0_15 = arith.constant 0 : index
    %29 = vector.load %arg4[%c0_14, %c0_15] : memref<8x8xf32, #tpu.memory_space<vmem>>, vector<8x8xf32>
    tpu.vector_store %arg4[%c0_14, %c0_15], %28 {strides = array<i32>} : memref<8x8xf32, #tpu.memory_space<vmem>>, vector<8x8xf32>,
    return
  }
  func.func @transform_0(%arg0: i32) -> (i32, i32) {
    %c0_i32 = arith.constant 0 : i32
    %c0_i32_0 = arith.constant 0 : i32
    return %arg0, %c0_i32 : i32, i32
  }
  func.func @transform_1(%arg0: i32) -> (i32, i32) {
    %c0_i32 = arith.constant 0 : i32
    %c0_i32_0 = arith.constant 0 : i32
    return %arg0, %c0_i32 : i32, i32
  }
  func.func @transform_2(%arg0: i32) -> (i32, i32) {
    %c0_i32 = arith.constant 0 : i32
    %c0_i32_0 = arith.constant 0 : i32
    %c0_i32_1 = arith.constant 0 : i32
    return %c0_i32, %c0_i32_0 : i32, i32
  }
  func.func @transform_3(%arg0: i32) -> (i32, i32) {
    %c0_i32 = arith.constant 0 : i32
    %c0_i32_0 = arith.constant 0 : i32
    return %arg0, %c0_i32 : i32, i32
  }
}

</mosaic_0001>

<bundles_post_ra>
// kernel: tpu_custom_call.1
= control target key start
LH: loop header
LB: loop body
LE: loop exit
PB: predicated region body
PF: predicated region fallthrough
CT: control target
= control target key end

     0   :  { %8 = vsyncpa [#allocation3], 0  ;;  %s578_s0 = inlined_call_operand.hbm [shape: f32[8,32], index: 0, kind: input, shape index: {}]   ;;  %s579_s1 = inlined_call_operand.hbm [shape: f32[8,32], index: 1, kind: input, shape index: {}]   ;;  %s580_s2 = inlined_call_operand.hbm [shape: f32[128,128], index: 2, kind: input, shape index: {}]   ;;  %s581_s3 = inlined_call_operand.hbm [shape: f32[8,8], index: 3, kind: output, shape index: {}]  }
   0x1   :  { %9 = vsyncpa [#allocation6], 0 }
   0x2   :  { %10 = vsyncpa [#allocation4], 0  ;;  %s518_s12 = smov [#allocation5]   ;;  %s519_s14 = smov [#allocation2]  }
   0x3   :  { %s27_s13 = sshll.u32 %s518_s12, 4  ;;  %s17_s15 = sshll.u32 %s519_s14, 4  ;;  %s28_s13 = int_to_ptr.vmem [resolvable:$true] %s27_s13  ;;  %s18_s15 = int_to_ptr.vmem [resolvable:$true] %s17_s15 }
   0x4   :  { %s440_s16 = scalar_lea.vmem %s28_s13, 128  ;;  %p445_p1 = scmp.lt.s32.totalorder %s28_s13, %s28_s13 }
   0x5   :  { %p441_p0 = scmp.ne.s32.totalorder %s28_s13, %s440_s16  ;;  %p446_p2 = scmp.lt.s32.totalorder %s440_s16, %s440_s16 }
   0x7   :  { %p447_p3 = por %p446_p2, %p445_p1 }
   0x9   :  { %p448_p4 = pnand %p447_p3, %p441_p0 }
   0xb   :  { %451 = shalt.err (!%p448_p4)
}
   0xc   :  { %30 = dma.hbm_to_vmem [thread:$0]  %s579_s1, 128, %s28_s13, [#allocation6]  }
   0xd   :  { %s460_s19 = scalar_lea.vmem %s18_s15, 128  ;;  %p465_p6 = scmp.lt.s32.totalorder %s18_s15, %s18_s15 }
   0xe   :  { %p461_p5 = scmp.ne.s32.totalorder %s18_s15, %s460_s19  ;;  %p466_p7 = scmp.lt.s32.totalorder %s460_s19, %s460_s19 }
  0x10   :  { %p467_p8 = por %p466_p7, %p465_p6 }
  0x12   :  { %p468_p9 = pnand %p467_p8, %p461_p5 }
  0x14   :  { %471 = shalt.err (!%p468_p9)
}
  0x15   :  { %20 = dma.hbm_to_vmem [thread:$0]  %s578_s0, 128, %s18_s15, [#allocation3]  }
  0x16   :  { %s520_s22 = smov [#allocation7]  }
  0x17   :  { %s36_s23 = sshll.u32 %s520_s22, 4  ;;  %s37_s23 = int_to_ptr.vmem [resolvable:$true] %s36_s23 }
  0x18   :  { %s480_s24 = scalar_lea.vmem %s37_s23, 2048  ;;  %p485_p11 = scmp.lt.s32.totalorder %s37_s23, %s37_s23 }
  0x19   :  { %p481_p10 = scmp.ne.s32.totalorder %s37_s23, %s480_s24  ;;  %p486_p12 = scmp.lt.s32.totalorder %s480_s24, %s480_s24 }
  0x1b   :  { %p487_p13 = por %p486_p12, %p485_p11 }
  0x1d   :  { %p488_p0 = pnand %p487_p13, %p481_p10 }
  0x1f   :  { %491 = shalt.err (!%p488_p0)
}
  0x20   :  { %s521_s1 = smov 128   ;;  %s522_s25 = smov 8  }
  0x21   :  { %42 = dma.hbm_to_vmem [thread:$0]  %s580_s2, 2048, %s37_s23, [#allocation6], %s521_s1, %s521_s1, %s522_s25  }
  0x22   :  { %512 = dma.done.wait [#allocation3], 128  }
  0x23   :  { %513 = vsyncadd [#allocation3], 4294967168 }
  0x24   :  { %514 = dma.done.wait [#allocation6], 2176  }
  0x25   :  { %515 = vsyncadd [#allocation6], 4294965120  ;;  %v53_v0 = vld [vmem:[#allocation5] sm:$0xff]  ;;  %s523_s0 = smov 32   ;;  %v524_v1 = vmov 0.0   ;;  %v85_v2 = vld [vmem:[#allocation7 + $0x40] sm:$0xff] }
  0x26   :  { %55 = vrot.lane.b32.xlu0 %v53_v0, %s523_s0  ;;  %378 = vmatprep.subr.mxu0 %v524_v1  ;;  %v84_v3 = vld [vmem:[#allocation7 + $0x38] sm:$0xff]  ;;  %v83_v4 = vld [vmem:[#allocation7 + $0x30] sm:$0xff]  ;;  %vm525_vm0 = vmmov 0   ;;  %v82_v5 = vld [vmem:[#allocation7 + $0x28] sm:$0xff]  ;;  %vm58_vm1 = vcmask 261120   ;;  %vm91_vm2 = vcmask 523264  }
  0x27   :  { %397 = vmatprep.subr.mxu1 %v524_v1  ;;  %379 = vmatpush3.msra.mxu0 %v85_v2  ;;  %v81_v6 = vld [vmem:[#allocation7 + $0x20] sm:$0xff]  ;;  %v80_v7 = vld [vmem:[#allocation7 + $0x18] sm:$0xff]  ;;  %v79_v8 = vld [vmem:[#allocation7 + $0x10] sm:$0xff]  ;;  %vm178_vm3 = vcmask 1043456   ;;  %vm174_vm4 = vcmask 162816   ;;  %vm259_vm5 = vcmask 1041408  }
  0x28   :  { %380 = vmatprep.subr.mxu0 %v524_v1  ;;  %394 = vmatprep.mubr.msk.f32.mxu0 %vm525_vm0, %v524_v1  ;;  %v78_v9 = vld [vmem:[#allocation7 + $0x8] sm:$0xff]  ;;  %v52_v10 = vld [vmem:[#allocation2] sm:$0xff]  ;;  %v352_v11 = vld [vmem:[#allocation7] ss:$0 sm:$0xff]  ;;  %vm255_vm6 = vcmask 80896   ;;  %s526_s2 = smov [#allocation8]  }
  0x29   :  { %381 = vmatpush3.msra.mxu0 %v84_v3  ;;  %403 = vmatprep.mubr.msk.f32.mxu1 %vm525_vm0, %v524_v1  ;;  %v353_v14 = vld [vmem:[#allocation7 + $0x1] ss:$0 sm:$0xff]  ;;  %v167_v22 = vld [vmem:[#allocation7 + $0x58] sm:$0xff]  ;;  %v166_v23 = vld [vmem:[#allocation7 + $0x50] sm:$0xff]  ;;  %s342_s28 = sshll.u32 %s526_s2, 4  ;;  %vm334_vm7 = vcmask 64512   ;;  %s343_s28 = int_to_ptr.vmem [resolvable:$true] %s342_s28 }
  0x2a   :  { %382 = vmatprep.subr.mxu0 %v524_v1  ;;  %v168_v21 = vld [vmem:[#allocation7 + $0x60] sm:$0xf]  ;;  %v355_v24 = vld [vmem:[#allocation7 + $0x48] ss:$0 sm:$0xff]  ;;  %v254_v29 = vld [vmem:[#allocation7 + $0x78] sm:$0x3]  ;;  %p497_p2 = scmp.lt.s32.totalorder %s343_s28, %s343_s28 }
  0x2b   :  { %383 = vmatpush3.msra.mxu0 %v83_v4  ;;  %398 = vmatpush3.msk.msra.mxu1 %vm178_vm3, %v168_v21  ;;  %v253_v30 = vld [vmem:[#allocation7 + $0x70] sm:$0xff]  ;;  %v357_v31 = vld [vmem:[#allocation7 + $0x68] ss:$0 sm:$0xff]  ;;  %s492_s29 = scalar_lea.vmem %s343_s28, 128 }
  0x2c   :  { %384 = vmatprep.subr.mxu0 %v524_v1  ;;  %399 = vmatprep.subr.mxu1 %v524_v1  ;;  %p493_p1 = scmp.ne.s32.totalorder %s343_s28, %s492_s29  ;;  %p498_p3 = scmp.lt.s32.totalorder %s492_s29, %s492_s29 }
  0x2d   :  { %385 = vmatpush3.msra.mxu0 %v82_v5  ;;  %400 = vmatpush3.msra.mxu1 %v167_v22 }
  0x2e   :  { %386 = vmatprep.subr.mxu0 %v524_v1  ;;  %401 = vmatprep.subr.mxu1 %v524_v1  ;;  %p499_p4 = por %p498_p3, %p497_p2 }
  0x2f   :  { %387 = vmatpush3.msra.mxu0 %v81_v6  ;;  %402 = vmatpush3.msra.mxu1 %v166_v23 }
  0x30   :  { %388 = vmatprep.subr.mxu0 %v524_v1  ;;  %406 = vmatprep.subr.mxu1 %v524_v1  ;;  %p500_p5 = pnand %p499_p4, %p493_p1 }
  0x31   :  { %389 = vmatpush3.msra.mxu0 %v80_v7 }
  0x32   :  { %390 = vmatprep.subr.mxu0 %v524_v1 }
  0x33   :  { %391 = vmatpush3.msra.mxu0 %v79_v8 }
  0x34   :  { %392 = vmatprep.subr.mxu0 %v524_v1 }
  0x35   :  { %393 = vmatpush3.msra.mxu0 %v78_v9 }
  0x98   :  { %v56_v12 = vpop.permute.xlu0 %55 }
  0x99   :  { %v59_v13 = vsel %vm58_vm1, %v52_v10, %v56_v12 }
  0x9a   :  { %v66_v15 = vmul.f32 %v352_v11, %v59_v13 }
  0x9c   :  { %v71_v16 = vadd.f32 %v353_v14, %v66_v15 }
  0x9e   :  { %v354_v17 = vmul.f32 -1.442695, %v71_v16 }
  0xa0   :  { %422 = vpow2.f32 %v354_v17 }
  0xad   :  { %v423_v18 = vpop.eup %422 }
  0xae   :  { %v75_v19 = vadd.f32 1.0, %v423_v18 }
  0xb0   :  { %424 = vrcp.f32 %v75_v19 }
  0xbd   :  { %v425_v20 = vpop.eup %424 }
  0xbe   :  { %395 = vmatmul.mubr.msk.f32.vlgmr.msra.gmra.mxu0 %vm91_vm2, %v425_v20 }
 0x17e   :  { %v161_v25 = vpop.f32.mrf.mxu0 }
 0x17f   :  { %v162_v26 = vadd.f32 %v355_v24, %v161_v25 }
 0x180   :  { %v396_v27 = vpop.f32.mrf.mxu0 }
 0x181   :  { %426 = vtanh.f32 %v162_v26 }
 0x18e   :  { %v427_v28 = vpop.eup %426 }
 0x18f   :  { %404 = vmatmul.mubr.msk.f32.vlgmr.msra.gmra.mxu1 %vm174_vm4, %v427_v28 }
 0x190   :  { %410 = vmatprep.mubr.msk.f32.mxu1 %vm525_vm0, %v524_v1  ;;  %407 = vmatpush3.msk.msra.mxu1 %vm259_vm5, %v254_v29 }
 0x191   :  { %408 = vmatprep.subr.mxu1 %v524_v1 }
 0x192   :  { %409 = vmatpush3.msra.mxu1 %v253_v30 }
 0x24f   :  { %v248_v32 = vpop.f32.mrf.mxu1 }
 0x250   :  { %v249_v33 = vadd.f32 %v357_v31, %v248_v32 }
 0x251   :  { %v405_v34 = vpop.f32.mrf.mxu1 }
 0x252   :  { %428 = vtanh.f32 %v249_v33 }
 0x25f   :  { %v429_v35 = vpop.eup %428 }
 0x260   :  { %411 = vmatmul.mubr.msk.f32.vlgmr.msra.gmra.mxu1 %vm255_vm6, %v429_v35 }
 0x320   :  { %v329_v36 = vpop.f32.mrf.mxu1 }
 0x321   :  { %430 = vtanh.f32 %v329_v36 }
 0x322   :  { %v412_v37 = vpop.f32.mrf.mxu1 }
 0x32e   :  { %v431_v38 = vpop.eup %430 }
 0x32f   :  { %335 = vst.msk [vmem:[#allocation8] sm:$0xff] %vm334_vm7, %v431_v38 }
 0x330   :  { %503 = shalt.err (!%p500_p5)
}
 0x331   :  { %345 = dma.vmem_to_hbm [thread:$0]  %s343_s28, 128, %s581_s3, [#allocation4]  }
 0x332   :  { %516 = dma.done.wait [#allocation4], 128  }
 0x333   :  { %517 = vsyncadd [#allocation4], 4294967168 }
 0x334   :  { %349 = vsyncpa [#allocation3], 1 }
 0x335   :  { %350 = vsyncpa [#allocation6], 1 }
 0x336   :  { %351 = vsyncpa [#allocation4], 1 }

</bundles_post_ra>
